<compile_context>
chip_gen: v6e
topology: v6e:2x2x1
jax: 0.10.0
libtpu: 0.0.40
codegen_flags: <defaults>
</compile_context>

<pallas_src>
import functools

import jax
import jax.numpy as jnp
from jax import lax
from jax.experimental import pallas as pl
from jax.experimental.pallas import tpu as pltpu


MAX_TILE_B = 128   # batch rows per grid step (keeps state in vregs; matches v5e MXU width)


def _price_lstm_kernel(x_ref,     # (tile_b*T, F)   batch-major flattened input tile
                       wih_ref,   # (F, 4H)         W_ih^T
                       whh_ref,   # (H, 4H)         W_hh^T
                       b_ref,     # (1, 4H)         b_ih + b_hh
                       w1_ref,    # (H, 16)         fc1 weight^T
                       b1_ref,    # (1, 16)
                       w2_ref,    # (1, 16)         out weight (row)
                       b2_ref,    # (1, 1)
                       o_ref,     # (tile_b, 1)     per-sample scalar output
                       pre_ref,   # (tile_b*T, 4H)  VMEM scratch: hoisted input projection
                       *, seq_len):
    T = seq_len
    BT, _ = x_ref.shape
    Bt = BT // T
    H = whh_ref.shape[0]

    # --- Hoisted input projection: one matmul for all timesteps, bias folded in ---
    pre_ref[...] = (jnp.dot(x_ref[...], wih_ref[...],
                            preferred_element_type=jnp.float32) + b_ref[...])

    whh = whh_ref[...]

    # Lane mask selecting the cell-candidate block g (PyTorch gate order i, f, g, o).
    lane = lax.broadcasted_iota(jnp.int32, (Bt, 4 * H), 1)
    g_mask = (lane >= 2 * H) & (lane < 3 * H)

    h = jnp.zeros((Bt, H), jnp.float32)
    c = jnp.zeros((Bt, H), jnp.float32)

    # Fully unrolled recurrence (T is small & static): one MXU matmul per step.
    for t in range(T):
        # Rows b*T + t of the hoisted projection (strided VMEM slice).
        pre_t = pre_ref[pl.ds(t, Bt, stride=T), :]
        gates = pre_t + jnp.dot(h, whh, preferred_element_type=jnp.float32)

        # Single EUP pass: tanh on g lanes; sigmoid(x) = 0.5*tanh(0.5x) + 0.5 elsewhere.
        th = jnp.tanh(jnp.where(g_mask, gates, 0.5 * gates))
        act = jnp.where(g_mask, th, 0.5 * th + 0.5)

        i_g = act[:, 0:H]
        f_g = act[:, H:2 * H]
        g_g = act[:, 2 * H:3 * H]
        o_g = act[:, 3 * H:4 * H]
        c = f_g * c + i_g * g_g
        h = o_g * jnp.tanh(c)

    # fc1 -> ReLU -> out.  The (16 -> 1) head is a VPU mul + lane reduce, so the
    # output stays a single f32 per sample (no 128-lane write amplification).
    z = jnp.maximum(
        jnp.dot(h, w1_ref[...], preferred_element_type=jnp.float32) + b1_ref[...], 0.0)
    o_ref[...] = jnp.sum(z * w2_ref[...], axis=1, keepdims=True) + b2_ref[...]


def _round_up(n, m):
    return ((n + m - 1) // m) * m


def price_lstm_forward(x, params):
    """x: (B, T, F) float32 (PyTorch batch_first).  Returns (B,) float32."""
    B, T, F = x.shape
    H = params["w_hh"].shape[1]

    # Tile selection: multiple of 8, <= 128, and >= 2 tiles whenever B >= 16 rows
    # so the "parallel" grid can engage both v7x TensorCores.
    B8 = _round_up(B, 8)
    if B8 >= 16:
        tile_b = min(MAX_TILE_B, _round_up((B8 + 1) // 2, 8))
    else:
        tile_b = B8
    B_pad = _round_up(B8, tile_b)
    grid_b = B_pad // tile_b

    # Batch-major flatten (contiguous -> no data movement); zero-pad only if needed.
    x2 = x.reshape(B * T, F).astype(jnp.float32)
    if B_pad != B:
        x2 = jnp.zeros((B_pad * T, F), jnp.float32).at[:B * T].set(x2)

    wih_t = params["w_ih"].T                                # (F, 4H)
    whh_t = params["w_hh"].T                                # (H, 4H)
    b = (params["b_ih"] + params["b_hh"])[None, :]          # (1, 4H)
    w1_t = params["fc1_w"].T                                # (H, 16)
    b1 = params["fc1_b"][None, :]                           # (1, 16)
    w2 = params["out_w"]                                    # (1, 16)
    b2 = params["out_b"][None, :]                           # (1, 1)

    def full_spec(arr):
        nd = arr.ndim
        return pl.BlockSpec(arr.shape, lambda i, _n=nd: (0,) * _n)

    kernel = functools.partial(_price_lstm_kernel, seq_len=T)

    out = pl.pallas_call(
        kernel,
        out_shape=jax.ShapeDtypeStruct((B_pad, 1), jnp.float32),
        grid_spec=pltpu.PrefetchScalarGridSpec(
            num_scalar_prefetch=0,
            grid=(grid_b,),
            in_specs=[
                pl.BlockSpec((tile_b * T, F), lambda i: (i, 0)),
                full_spec(wih_t),
                full_spec(whh_t),
                full_spec(b),
                full_spec(w1_t),
                full_spec(b1),
                full_spec(w2),
                full_spec(b2),
            ],
            out_specs=pl.BlockSpec((tile_b, 1), lambda i: (i, 0)),
            scratch_shapes=[pltpu.VMEM((tile_b * T, 4 * H), jnp.float32)],
        ),
        compiler_params=pltpu.CompilerParams(
            dimension_semantics=("parallel",)),
    )(x2, wih_t, whh_t, b, w1_t, b1, w2, b2)

    return out[:B, 0]                                       # squeeze(1), drop batch padding


def init_params(key, n_features, hidden=32):
    """Deterministic init matching PyTorch module shapes (U(-1/sqrt(H), 1/sqrt(H)))."""
    ks = jax.random.split(key, 8)
    s = 1.0 / jnp.sqrt(jnp.float32(hidden))
    u = lambda k, shape: jax.random.uniform(k, shape, jnp.float32, -s, s)
    return {
        "w_ih":  u(ks[0], (4 * hidden, n_features)),
        "w_hh":  u(ks[1], (4 * hidden, hidden)),
        "b_ih":  u(ks[2], (4 * hidden,)),
        "b_hh":  u(ks[3], (4 * hidden,)),
        "fc1_w": u(ks[4], (16, hidden)),
        "fc1_b": u(ks[5], (16,)),
        "out_w": u(ks[6], (1, 16)),
        "out_b": u(ks[7], (1,)),
    }


def _reference_forward(x, params):
    """Pure-JAX reference of the same forward pass for a sanity check."""
    B, T, F = x.shape
    H = params["w_hh"].shape[1]
    wih_t, whh_t = params["w_ih"].T, params["w_hh"].T
    b = params["b_ih"] + params["b_hh"]

    def step(carry, xt):
        h, c = carry
        g = xt @ wih_t + h @ whh_t + b
        i, f, gg, o = (jax.nn.sigmoid(g[:, :H]), jax.nn.sigmoid(g[:, H:2 * H]),
                       jnp.tanh(g[:, 2 * H:3 * H]), jax.nn.sigmoid(g[:, 3 * H:]))
        c = f * c + i * gg
        h = o * jnp.tanh(c)
        return (h, c), None

    (h, _), _ = lax.scan(step, (jnp.zeros((B, H)), jnp.zeros((B, H))),
                         jnp.transpose(x, (1, 0, 2)))
    z = jnp.maximum(h @ params["fc1_w"].T + params["fc1_b"], 0.0)
    return (z @ params["out_w"].T + params["out_b"])[:, 0]


if __name__ == "__main__":
    key = jax.random.PRNGKey(0)
    k_x, k_p, k_x2 = jax.random.split(key, 3)

    B, T, F, H = 4, 8, 8, 32
    x = jax.random.normal(k_x, (B, T, F), jnp.float32)
    params = init_params(k_p, n_features=F, hidden=H)

    y = jax.block_until_ready(price_lstm_forward(x, params))
    y_ref = _reference_forward(x, params)
    assert y.shape == (B,)
    assert jnp.allclose(y, y_ref, atol=1e-5, rtol=1e-5), (y, y_ref)

    # Second config: exercises batch padding and the >= 2-tile parallel grid.
    B2 = 37
    x_big = jax.random.normal(k_x2, (B2, T, F), jnp.float32)
    y_big = jax.block_until_ready(price_lstm_forward(x_big, params))
    y_big_ref = _reference_forward(x_big, params)
    assert y_big.shape == (B2,)
    assert jnp.allclose(y_big, y_big_ref, atol=1e-5, rtol=1e-5), (y_big, y_big_ref)

    print("KERNEL_OK")
</pallas_src>

<mosaic_0001>
module attributes {stable_mosaic.version = 11 : i64} {
  func.func @_price_lstm_kernel(%arg0: i32, %arg1: memref<64x8xf32, #tpu.memory_space<vmem>>, %arg2: memref<8x128xf32, #tpu.memory_space<vmem>>, %arg3: memref<32x128xf32, #tpu.memory_space<vmem>>, %arg4: memref<1x128xf32, #tpu.memory_space<vmem>>, %arg5: memref<32x16xf32, #tpu.memory_space<vmem>>, %arg6: memref<1x16xf32, #tpu.memory_space<vmem>>, %arg7: memref<1x16xf32, #tpu.memory_space<vmem>>, %arg8: memref<1x1xf32, #tpu.memory_space<vmem>>, %arg9: memref<8x1xf32, #tpu.memory_space<vmem>>, %arg10: memref<64x128xf32, #tpu.memory_space<vmem>>) attributes {dimension_semantics = [#tpu.dimension_semantics<parallel>], iteration_bounds = array<i64: 1>, scalar_prefetch = 0 : i64, scratch_operands = 1 : i64, tpu.core_type = #tpu.core_type<tc>, window_params = [{transform_indices = @transform_0, window_bounds = array<i64: 64, 8>}, {pipeline_mode = #tpu.pipeline_mode<synchronous>, transform_indices = @transform_1, window_bounds = array<i64: 8, 128>}, {pipeline_mode = #tpu.pipeline_mode<synchronous>, transform_indices = @transform_2, window_bounds = array<i64: 32, 128>}, {pipeline_mode = #tpu.pipeline_mode<synchronous>, transform_indices = @transform_3, window_bounds = array<i64: 1, 128>}, {pipeline_mode = #tpu.pipeline_mode<synchronous>, transform_indices = @transform_4, window_bounds = array<i64: 32, 16>}, {pipeline_mode = #tpu.pipeline_mode<synchronous>, transform_indices = @transform_5, window_bounds = array<i64: 1, 16>}, {pipeline_mode = #tpu.pipeline_mode<synchronous>, transform_indices = @transform_6, window_bounds = array<i64: 1, 16>}, {pipeline_mode = #tpu.pipeline_mode<synchronous>, transform_indices = @transform_7, window_bounds = array<i64: 1, 1>}, {transform_indices = @transform_8, window_bounds = array<i64: 8, 1>}]} {
    %c0 = arith.constant 0 : index
    %c0_0 = arith.constant 0 : index
    %0 = vector.load %arg1[%c0, %c0_0] : memref<64x8xf32, #tpu.memory_space<vmem>>, vector<64x8xf32>
    %c0_1 = arith.constant 0 : index
    %c0_2 = arith.constant 0 : index
    %1 = vector.load %arg2[%c0_1, %c0_2] : memref<8x128xf32, #tpu.memory_space<vmem>>, vector<8x128xf32>
    %cst = arith.constant dense<0.000000e+00> : vector<64x128xf32>
    %2 = tpu.matmul %0, %1, %cst {dimension_numbers = #tpu.dot_dimension_numbers<[1], [0], [0], [1], [0, 0, 1, 1], [], []>} : vector<64x8xf32>, vector<8x128xf32>, vector<64x128xf32> -> vector<64x128xf32>
    %c0_3 = arith.constant 0 : index
    %c0_4 = arith.constant 0 : index
    %3 = vector.load %arg4[%c0_3, %c0_4] : memref<1x128xf32, #tpu.memory_space<vmem>>, vector<1x128xf32>
    %4 = vector.broadcast %3 : vector<1x128xf32> to vector<64x128xf32>
    %5 = arith.addf %2, %4 : vector<64x128xf32>
    %c0_5 = arith.constant 0 : index
    %c0_6 = arith.constant 0 : index
    %6 = vector.load %arg10[%c0_5, %c0_6] : memref<64x128xf32, #tpu.memory_space<vmem>>, vector<64x128xf32>
    tpu.vector_store %arg10[%c0_5, %c0_6], %5 {strides = array<i32>} : memref<64x128xf32, #tpu.memory_space<vmem>>, vector<64x128xf32>,
    %c0_7 = arith.constant 0 : index
    %c0_8 = arith.constant 0 : index
    %7 = vector.load %arg3[%c0_7, %c0_8] : memref<32x128xf32, #tpu.memory_space<vmem>>, vector<32x128xf32>
    %8 = tpu.iota {dimensions = array<i32: 1>} : vector<8x128xi32>
    %c64_i32 = arith.constant 64 : i32
    %9 = vector.broadcast %c64_i32 : i32 to vector<8x128xi32>
    %10 = arith.cmpi sge, %8, %9 : vector<8x128xi32>
    %c96_i32 = arith.constant 96 : i32
    %11 = vector.broadcast %c96_i32 : i32 to vector<8x128xi32>
    %12 = arith.cmpi slt, %8, %11 : vector<8x128xi32>
    %13 = arith.andi %10, %12 : vector<8x128xi1>
    %cst_9 = arith.constant 0.000000e+00 : f32
    %14 = vector.broadcast %cst_9 : f32 to vector<8x32xf32>
    %cst_10 = arith.constant 0.000000e+00 : f32
    %15 = vector.broadcast %cst_10 : f32 to vector<8x32xf32>
    %c0_11 = arith.constant 0 : index
    %c0_12 = arith.constant 0 : index
    %16 = tpu.strided_load %arg10[%c0_11, %c0_12] {strides = array<i32: 8, 1>} : memref<64x128xf32, #tpu.memory_space<vmem>>, vector<8x128xf32>
    %cst_13 = arith.constant dense<0.000000e+00> : vector<8x128xf32>
    %17 = tpu.matmul %14, %7, %cst_13 {dimension_numbers = #tpu.dot_dimension_numbers<[1], [0], [0], [1], [0, 0, 1, 1], [], []>} : vector<8x32xf32>, vector<32x128xf32>, vector<8x128xf32> -> vector<8x128xf32>
    %18 = arith.addf %16, %17 : vector<8x128xf32>
    %cst_14 = arith.constant 5.000000e-01 : f32
    %19 = vector.broadcast %cst_14 : f32 to vector<8x128xf32>
    %20 = arith.mulf %19, %18 : vector<8x128xf32>
    %21 = arith.select %13, %18, %20 : vector<8x128xi1>, vector<8x128xf32>
    %22 = math.tanh %21 : vector<8x128xf32>
    %cst_15 = arith.constant 5.000000e-01 : f32
    %23 = vector.broadcast %cst_15 : f32 to vector<8x128xf32>
    %24 = arith.mulf %23, %22 : vector<8x128xf32>
    %cst_16 = arith.constant 5.000000e-01 : f32
    %25 = vector.broadcast %cst_16 : f32 to vector<8x128xf32>
    %26 = arith.addf %24, %25 : vector<8x128xf32>
    %27 = arith.select %13, %22, %26 : vector<8x128xi1>, vector<8x128xf32>
    %28 = vector.extract_strided_slice %27 {offsets = [0, 0], sizes = [8, 32], strides = [1, 1]} : vector<8x128xf32> to vector<8x32xf32>
    %29 = vector.extract_strided_slice %27 {offsets = [0, 32], sizes = [8, 32], strides = [1, 1]} : vector<8x128xf32> to vector<8x32xf32>
    %30 = vector.extract_strided_slice %27 {offsets = [0, 64], sizes = [8, 32], strides = [1, 1]} : vector<8x128xf32> to vector<8x32xf32>
    %31 = vector.extract_strided_slice %27 {offsets = [0, 96], sizes = [8, 32], strides = [1, 1]} : vector<8x128xf32> to vector<8x32xf32>
    %32 = arith.mulf %29, %15 : vector<8x32xf32>
    %33 = arith.mulf %28, %30 : vector<8x32xf32>
    %34 = arith.addf %32, %33 : vector<8x32xf32>
    %35 = math.tanh %34 : vector<8x32xf32>
    %36 = arith.mulf %31, %35 : vector<8x32xf32>
    %c1 = arith.constant 1 : index
    %c0_17 = arith.constant 0 : index
    %37 = tpu.strided_load %arg10[%c1, %c0_17] {strides = array<i32: 8, 1>} : memref<64x128xf32, #tpu.memory_space<vmem>>, vector<8x128xf32>
    %cst_18 = arith.constant dense<0.000000e+00> : vector<8x128xf32>
    %38 = tpu.matmul %36, %7, %cst_18 {dimension_numbers = #tpu.dot_dimension_numbers<[1], [0], [0], [1], [0, 0, 1, 1], [], []>} : vector<8x32xf32>, vector<32x128xf32>, vector<8x128xf32> -> vector<8x128xf32>
    %39 = arith.addf %37, %38 : vector<8x128xf32>
    %cst_19 = arith.constant 5.000000e-01 : f32
    %40 = vector.broadcast %cst_19 : f32 to vector<8x128xf32>
    %41 = arith.mulf %40, %39 : vector<8x128xf32>
    %42 = arith.select %13, %39, %41 : vector<8x128xi1>, vector<8x128xf32>
    %43 = math.tanh %42 : vector<8x128xf32>
    %cst_20 = arith.constant 5.000000e-01 : f32
    %44 = vector.broadcast %cst_20 : f32 to vector<8x128xf32>
    %45 = arith.mulf %44, %43 : vector<8x128xf32>
    %cst_21 = arith.constant 5.000000e-01 : f32
    %46 = vector.broadcast %cst_21 : f32 to vector<8x128xf32>
    %47 = arith.addf %45, %46 : vector<8x128xf32>
    %48 = arith.select %13, %43, %47 : vector<8x128xi1>, vector<8x128xf32>
    %49 = vector.extract_strided_slice %48 {offsets = [0, 0], sizes = [8, 32], strides = [1, 1]} : vector<8x128xf32> to vector<8x32xf32>
    %50 = vector.extract_strided_slice %48 {offsets = [0, 32], sizes = [8, 32], strides = [1, 1]} : vector<8x128xf32> to vector<8x32xf32>
    %51 = vector.extract_strided_slice %48 {offsets = [0, 64], sizes = [8, 32], strides = [1, 1]} : vector<8x128xf32> to vector<8x32xf32>
    %52 = vector.extract_strided_slice %48 {offsets = [0, 96], sizes = [8, 32], strides = [1, 1]} : vector<8x128xf32> to vector<8x32xf32>
    %53 = arith.mulf %50, %34 : vector<8x32xf32>
    %54 = arith.mulf %49, %51 : vector<8x32xf32>
    %55 = arith.addf %53, %54 : vector<8x32xf32>
    %56 = math.tanh %55 : vector<8x32xf32>
    %57 = arith.mulf %52, %56 : vector<8x32xf32>
    %c2 = arith.constant 2 : index
    %c0_22 = arith.constant 0 : index
    %58 = tpu.strided_load %arg10[%c2, %c0_22] {strides = array<i32: 8, 1>} : memref<64x128xf32, #tpu.memory_space<vmem>>, vector<8x128xf32>
    %cst_23 = arith.constant dense<0.000000e+00> : vector<8x128xf32>
    %59 = tpu.matmul %57, %7, %cst_23 {dimension_numbers = #tpu.dot_dimension_numbers<[1], [0], [0], [1], [0, 0, 1, 1], [], []>} : vector<8x32xf32>, vector<32x128xf32>, vector<8x128xf32> -> vector<8x128xf32>
    %60 = arith.addf %58, %59 : vector<8x128xf32>
    %cst_24 = arith.constant 5.000000e-01 : f32
    %61 = vector.broadcast %cst_24 : f32 to vector<8x128xf32>
    %62 = arith.mulf %61, %60 : vector<8x128xf32>
    %63 = arith.select %13, %60, %62 : vector<8x128xi1>, vector<8x128xf32>
    %64 = math.tanh %63 : vector<8x128xf32>
    %cst_25 = arith.constant 5.000000e-01 : f32
    %65 = vector.broadcast %cst_25 : f32 to vector<8x128xf32>
    %66 = arith.mulf %65, %64 : vector<8x128xf32>
    %cst_26 = arith.constant 5.000000e-01 : f32
    %67 = vector.broadcast %cst_26 : f32 to vector<8x128xf32>
    %68 = arith.addf %66, %67 : vector<8x128xf32>
    %69 = arith.select %13, %64, %68 : vector<8x128xi1>, vector<8x128xf32>
    %70 = vector.extract_strided_slice %69 {offsets = [0, 0], sizes = [8, 32], strides = [1, 1]} : vector<8x128xf32> to vector<8x32xf32>
    %71 = vector.extract_strided_slice %69 {offsets = [0, 32], sizes = [8, 32], strides = [1, 1]} : vector<8x128xf32> to vector<8x32xf32>
    %72 = vector.extract_strided_slice %69 {offsets = [0, 64], sizes = [8, 32], strides = [1, 1]} : vector<8x128xf32> to vector<8x32xf32>
    %73 = vector.extract_strided_slice %69 {offsets = [0, 96], sizes = [8, 32], strides = [1, 1]} : vector<8x128xf32> to vector<8x32xf32>
    %74 = arith.mulf %71, %55 : vector<8x32xf32>
    %75 = arith.mulf %70, %72 : vector<8x32xf32>
    %76 = arith.addf %74, %75 : vector<8x32xf32>
    %77 = math.tanh %76 : vector<8x32xf32>
    %78 = arith.mulf %73, %77 : vector<8x32xf32>
    %c3 = arith.constant 3 : index
    %c0_27 = arith.constant 0 : index
    %79 = tpu.strided_load %arg10[%c3, %c0_27] {strides = array<i32: 8, 1>} : memref<64x128xf32, #tpu.memory_space<vmem>>, vector<8x128xf32>
    %cst_28 = arith.constant dense<0.000000e+00> : vector<8x128xf32>
    %80 = tpu.matmul %78, %7, %cst_28 {dimension_numbers = #tpu.dot_dimension_numbers<[1], [0], [0], [1], [0, 0, 1, 1], [], []>} : vector<8x32xf32>, vector<32x128xf32>, vector<8x128xf32> -> vector<8x128xf32>
    %81 = arith.addf %79, %80 : vector<8x128xf32>
    %cst_29 = arith.constant 5.000000e-01 : f32
    %82 = vector.broadcast %cst_29 : f32 to vector<8x128xf32>
    %83 = arith.mulf %82, %81 : vector<8x128xf32>
    %84 = arith.select %13, %81, %83 : vector<8x128xi1>, vector<8x128xf32>
    %85 = math.tanh %84 : vector<8x128xf32>
    %cst_30 = arith.constant 5.000000e-01 : f32
    %86 = vector.broadcast %cst_30 : f32 to vector<8x128xf32>
    %87 = arith.mulf %86, %85 : vector<8x128xf32>
    %cst_31 = arith.constant 5.000000e-01 : f32
    %88 = vector.broadcast %cst_31 : f32 to vector<8x128xf32>
    %89 = arith.addf %87, %88 : vector<8x128xf32>
    %90 = arith.select %13, %85, %89 : vector<8x128xi1>, vector<8x128xf32>
    %91 = vector.extract_strided_slice %90 {offsets = [0, 0], sizes = [8, 32], strides = [1, 1]} : vector<8x128xf32> to vector<8x32xf32>
    %92 = vector.extract_strided_slice %90 {offsets = [0, 32], sizes = [8, 32], strides = [1, 1]} : vector<8x128xf32> to vector<8x32xf32>
    %93 = vector.extract_strided_slice %90 {offsets = [0, 64], sizes = [8, 32], strides = [1, 1]} : vector<8x128xf32> to vector<8x32xf32>
    %94 = vector.extract_strided_slice %90 {offsets = [0, 96], sizes = [8, 32], strides = [1, 1]} : vector<8x128xf32> to vector<8x32xf32>
    %95 = arith.mulf %92, %76 : vector<8x32xf32>
    %96 = arith.mulf %91, %93 : vector<8x32xf32>
    %97 = arith.addf %95, %96 : vector<8x32xf32>
    %98 = math.tanh %97 : vector<8x32xf32>
    %99 = arith.mulf %94, %98 : vector<8x32xf32>
    %c4 = arith.constant 4 : index
    %c0_32 = arith.constant 0 : index
    %100 = tpu.strided_load %arg10[%c4, %c0_32] {strides = array<i32: 8, 1>} : memref<64x128xf32, #tpu.memory_space<vmem>>, vector<8x128xf32>
    %cst_33 = arith.constant dense<0.000000e+00> : vector<8x128xf32>
    %101 = tpu.matmul %99, %7, %cst_33 {dimension_numbers = #tpu.dot_dimension_numbers<[1], [0], [0], [1], [0, 0, 1, 1], [], []>} : vector<8x32xf32>, vector<32x128xf32>, vector<8x128xf32> -> vector<8x128xf32>
    %102 = arith.addf %100, %101 : vector<8x128xf32>
    %cst_34 = arith.constant 5.000000e-01 : f32
    %103 = vector.broadcast %cst_34 : f32 to vector<8x128xf32>
    %104 = arith.mulf %103, %102 : vector<8x128xf32>
    %105 = arith.select %13, %102, %104 : vector<8x128xi1>, vector<8x128xf32>
    %106 = math.tanh %105 : vector<8x128xf32>
    %cst_35 = arith.constant 5.000000e-01 : f32
    %107 = vector.broadcast %cst_35 : f32 to vector<8x128xf32>
    %108 = arith.mulf %107, %106 : vector<8x128xf32>
    %cst_36 = arith.constant 5.000000e-01 : f32
    %109 = vector.broadcast %cst_36 : f32 to vector<8x128xf32>
    %110 = arith.addf %108, %109 : vector<8x128xf32>
    %111 = arith.select %13, %106, %110 : vector<8x128xi1>, vector<8x128xf32>
    %112 = vector.extract_strided_slice %111 {offsets = [0, 0], sizes = [8, 32], strides = [1, 1]} : vector<8x128xf32> to vector<8x32xf32>
    %113 = vector.extract_strided_slice %111 {offsets = [0, 32], sizes = [8, 32], strides = [1, 1]} : vector<8x128xf32> to vector<8x32xf32>
    %114 = vector.extract_strided_slice %111 {offsets = [0, 64], sizes = [8, 32], strides = [1, 1]} : vector<8x128xf32> to vector<8x32xf32>
    %115 = vector.extract_strided_slice %111 {offsets = [0, 96], sizes = [8, 32], strides = [1, 1]} : vector<8x128xf32> to vector<8x32xf32>
    %116 = arith.mulf %113, %97 : vector<8x32xf32>
    %117 = arith.mulf %112, %114 : vector<8x32xf32>
    %118 = arith.addf %116, %117 : vector<8x32xf32>
    %119 = math.tanh %118 : vector<8x32xf32>
    %120 = arith.mulf %115, %119 : vector<8x32xf32>
    %c5 = arith.constant 5 : index
    %c0_37 = arith.constant 0 : index
    %121 = tpu.strided_load %arg10[%c5, %c0_37] {strides = array<i32: 8, 1>} : memref<64x128xf32, #tpu.memory_space<vmem>>, vector<8x128xf32>
    %cst_38 = arith.constant dense<0.000000e+00> : vector<8x128xf32>
    %122 = tpu.matmul %120, %7, %cst_38 {dimension_numbers = #tpu.dot_dimension_numbers<[1], [0], [0], [1], [0, 0, 1, 1], [], []>} : vector<8x32xf32>, vector<32x128xf32>, vector<8x128xf32> -> vector<8x128xf32>
    %123 = arith.addf %121, %122 : vector<8x128xf32>
    %cst_39 = arith.constant 5.000000e-01 : f32
    %124 = vector.broadcast %cst_39 : f32 to vector<8x128xf32>
    %125 = arith.mulf %124, %123 : vector<8x128xf32>
    %126 = arith.select %13, %123, %125 : vector<8x128xi1>, vector<8x128xf32>
    %127 = math.tanh %126 : vector<8x128xf32>
    %cst_40 = arith.constant 5.000000e-01 : f32
    %128 = vector.broadcast %cst_40 : f32 to vector<8x128xf32>
    %129 = arith.mulf %128, %127 : vector<8x128xf32>
    %cst_41 = arith.constant 5.000000e-01 : f32
    %130 = vector.broadcast %cst_41 : f32 to vector<8x128xf32>
    %131 = arith.addf %129, %130 : vector<8x128xf32>
    %132 = arith.select %13, %127, %131 : vector<8x128xi1>, vector<8x128xf32>
    %133 = vector.extract_strided_slice %132 {offsets = [0, 0], sizes = [8, 32], strides = [1, 1]} : vector<8x128xf32> to vector<8x32xf32>
    %134 = vector.extract_strided_slice %132 {offsets = [0, 32], sizes = [8, 32], strides = [1, 1]} : vector<8x128xf32> to vector<8x32xf32>
    %135 = vector.extract_strided_slice %132 {offsets = [0, 64], sizes = [8, 32], strides = [1, 1]} : vector<8x128xf32> to vector<8x32xf32>
    %136 = vector.extract_strided_slice %132 {offsets = [0, 96], sizes = [8, 32], strides = [1, 1]} : vector<8x128xf32> to vector<8x32xf32>
    %137 = arith.mulf %134, %118 : vector<8x32xf32>
    %138 = arith.mulf %133, %135 : vector<8x32xf32>
    %139 = arith.addf %137, %138 : vector<8x32xf32>
    %140 = math.tanh %139 : vector<8x32xf32>
    %141 = arith.mulf %136, %140 : vector<8x32xf32>
    %c6 = arith.constant 6 : index
    %c0_42 = arith.constant 0 : index
    %142 = tpu.strided_load %arg10[%c6, %c0_42] {strides = array<i32: 8, 1>} : memref<64x128xf32, #tpu.memory_space<vmem>>, vector<8x128xf32>
    %cst_43 = arith.constant dense<0.000000e+00> : vector<8x128xf32>
    %143 = tpu.matmul %141, %7, %cst_43 {dimension_numbers = #tpu.dot_dimension_numbers<[1], [0], [0], [1], [0, 0, 1, 1], [], []>} : vector<8x32xf32>, vector<32x128xf32>, vector<8x128xf32> -> vector<8x128xf32>
    %144 = arith.addf %142, %143 : vector<8x128xf32>
    %cst_44 = arith.constant 5.000000e-01 : f32
    %145 = vector.broadcast %cst_44 : f32 to vector<8x128xf32>
    %146 = arith.mulf %145, %144 : vector<8x128xf32>
    %147 = arith.select %13, %144, %146 : vector<8x128xi1>, vector<8x128xf32>
    %148 = math.tanh %147 : vector<8x128xf32>
    %cst_45 = arith.constant 5.000000e-01 : f32
    %149 = vector.broadcast %cst_45 : f32 to vector<8x128xf32>
    %150 = arith.mulf %149, %148 : vector<8x128xf32>
    %cst_46 = arith.constant 5.000000e-01 : f32
    %151 = vector.broadcast %cst_46 : f32 to vector<8x128xf32>
    %152 = arith.addf %150, %151 : vector<8x128xf32>
    %153 = arith.select %13, %148, %152 : vector<8x128xi1>, vector<8x128xf32>
    %154 = vector.extract_strided_slice %153 {offsets = [0, 0], sizes = [8, 32], strides = [1, 1]} : vector<8x128xf32> to vector<8x32xf32>
    %155 = vector.extract_strided_slice %153 {offsets = [0, 32], sizes = [8, 32], strides = [1, 1]} : vector<8x128xf32> to vector<8x32xf32>
    %156 = vector.extract_strided_slice %153 {offsets = [0, 64], sizes = [8, 32], strides = [1, 1]} : vector<8x128xf32> to vector<8x32xf32>
    %157 = vector.extract_strided_slice %153 {offsets = [0, 96], sizes = [8, 32], strides = [1, 1]} : vector<8x128xf32> to vector<8x32xf32>
    %158 = arith.mulf %155, %139 : vector<8x32xf32>
    %159 = arith.mulf %154, %156 : vector<8x32xf32>
    %160 = arith.addf %158, %159 : vector<8x32xf32>
    %161 = math.tanh %160 : vector<8x32xf32>
    %162 = arith.mulf %157, %161 : vector<8x32xf32>
    %c7 = arith.constant 7 : index
    %c0_47 = arith.constant 0 : index
    %163 = tpu.strided_load %arg10[%c7, %c0_47] {strides = array<i32: 8, 1>} : memref<64x128xf32, #tpu.memory_space<vmem>>, vector<8x128xf32>
    %cst_48 = arith.constant dense<0.000000e+00> : vector<8x128xf32>
    %164 = tpu.matmul %162, %7, %cst_48 {dimension_numbers = #tpu.dot_dimension_numbers<[1], [0], [0], [1], [0, 0, 1, 1], [], []>} : vector<8x32xf32>, vector<32x128xf32>, vector<8x128xf32> -> vector<8x128xf32>
    %165 = arith.addf %163, %164 : vector<8x128xf32>
    %cst_49 = arith.constant 5.000000e-01 : f32
    %166 = vector.broadcast %cst_49 : f32 to vector<8x128xf32>
    %167 = arith.mulf %166, %165 : vector<8x128xf32>
    %168 = arith.select %13, %165, %167 : vector<8x128xi1>, vector<8x128xf32>
    %169 = math.tanh %168 : vector<8x128xf32>
    %cst_50 = arith.constant 5.000000e-01 : f32
    %170 = vector.broadcast %cst_50 : f32 to vector<8x128xf32>
    %171 = arith.mulf %170, %169 : vector<8x128xf32>
    %cst_51 = arith.constant 5.000000e-01 : f32
    %172 = vector.broadcast %cst_51 : f32 to vector<8x128xf32>
    %173 = arith.addf %171, %172 : vector<8x128xf32>
    %174 = arith.select %13, %169, %173 : vector<8x128xi1>, vector<8x128xf32>
    %175 = vector.extract_strided_slice %174 {offsets = [0, 0], sizes = [8, 32], strides = [1, 1]} : vector<8x128xf32> to vector<8x32xf32>
    %176 = vector.extract_strided_slice %174 {offsets = [0, 32], sizes = [8, 32], strides = [1, 1]} : vector<8x128xf32> to vector<8x32xf32>
    %177 = vector.extract_strided_slice %174 {offsets = [0, 64], sizes = [8, 32], strides = [1, 1]} : vector<8x128xf32> to vector<8x32xf32>
    %178 = vector.extract_strided_slice %174 {offsets = [0, 96], sizes = [8, 32], strides = [1, 1]} : vector<8x128xf32> to vector<8x32xf32>
    %179 = arith.mulf %176, %160 : vector<8x32xf32>
    %180 = arith.mulf %175, %177 : vector<8x32xf32>
    %181 = arith.addf %179, %180 : vector<8x32xf32>
    %182 = math.tanh %181 : vector<8x32xf32>
    %183 = arith.mulf %178, %182 : vector<8x32xf32>
    %c0_52 = arith.constant 0 : index
    %c0_53 = arith.constant 0 : index
    %184 = vector.load %arg5[%c0_52, %c0_53] : memref<32x16xf32, #tpu.memory_space<vmem>>, vector<32x16xf32>
    %cst_54 = arith.constant dense<0.000000e+00> : vector<8x16xf32>
    %185 = tpu.matmul %183, %184, %cst_54 {dimension_numbers = #tpu.dot_dimension_numbers<[1], [0], [0], [1], [0, 0, 1, 1], [], []>} : vector<8x32xf32>, vector<32x16xf32>, vector<8x16xf32> -> vector<8x16xf32>
    %c0_55 = arith.constant 0 : index
    %c0_56 = arith.constant 0 : index
    %186 = vector.load %arg6[%c0_55, %c0_56] : memref<1x16xf32, #tpu.memory_space<vmem>>, vector<1x16xf32>
    %187 = vector.broadcast %186 : vector<1x16xf32> to vector<8x16xf32>
    %188 = arith.addf %185, %187 : vector<8x16xf32>
    %cst_57 = arith.constant 0.000000e+00 : f32
    %189 = vector.broadcast %cst_57 : f32 to vector<8x16xf32>
    %190 = arith.maximumf %188, %189 : vector<8x16xf32>
    %c0_58 = arith.constant 0 : index
    %c0_59 = arith.constant 0 : index
    %191 = vector.load %arg7[%c0_58, %c0_59] : memref<1x16xf32, #tpu.memory_space<vmem>>, vector<1x16xf32>
    %192 = vector.broadcast %191 : vector<1x16xf32> to vector<8x16xf32>
    %193 = arith.mulf %190, %192 : vector<8x16xf32>
    %cst_60 = arith.constant dense<0.000000e+00> : vector<8xf32>
    %194 = vector.multi_reduction <add>, %193, %cst_60 [1] : vector<8x16xf32> to vector<8xf32>
    %195 = vector.shape_cast %194 : vector<8xf32> to vector<8x1xf32>
    %c0_61 = arith.constant 0 : index
    %c0_62 = arith.constant 0 : index
    %196 = vector.load %arg8[%c0_61, %c0_62] : memref<1x1xf32, #tpu.memory_space<vmem>>, vector<1x1xf32>
    %197 = vector.broadcast %196 : vector<1x1xf32> to vector<8x1xf32>
    %198 = arith.addf %195, %197 : vector<8x1xf32>
    %c0_63 = arith.constant 0 : index
    %c0_64 = arith.constant 0 : index
    %199 = vector.load %arg9[%c0_63, %c0_64] : memref<8x1xf32, #tpu.memory_space<vmem>>, vector<8x1xf32>
    tpu.vector_store %arg9[%c0_63, %c0_64], %198 {strides = array<i32>} : memref<8x1xf32, #tpu.memory_space<vmem>>, vector<8x1xf32>,
    return
  }
  func.func @transform_0(%arg0: i32) -> (i32, i32) {
    %c0_i32 = arith.constant 0 : i32
    %c0_i32_0 = arith.constant 0 : i32
    return %arg0, %c0_i32 : i32, i32
  }
  func.func @transform_1(%arg0: i32) -> (i32, i32) {
    %c0_i32 = arith.constant 0 : i32
    %c0_i32_0 = arith.constant 0 : i32
    %c0_i32_1 = arith.constant 0 : i32
    return %c0_i32, %c0_i32_0 : i32, i32
  }
  func.func @transform_2(%arg0: i32) -> (i32, i32) {
    %c0_i32 = arith.constant 0 : i32
    %c0_i32_0 = arith.constant 0 : i32
    %c0_i32_1 = arith.constant 0 : i32
    return %c0_i32, %c0_i32_0 : i32, i32
  }
  func.func @transform_3(%arg0: i32) -> (i32, i32) {
    %c0_i32 = arith.constant 0 : i32
    %c0_i32_0 = arith.constant 0 : i32
    %c0_i32_1 = arith.constant 0 : i32
    return %c0_i32, %c0_i32_0 : i32, i32
  }
  func.func @transform_4(%arg0: i32) -> (i32, i32) {
    %c0_i32 = arith.constant 0 : i32
    %c0_i32_0 = arith.constant 0 : i32
    %c0_i32_1 = arith.constant 0 : i32
    return %c0_i32, %c0_i32_0 : i32, i32
  }
  func.func @transform_5(%arg0: i32) -> (i32, i32) {
    %c0_i32 = arith.constant 0 : i32
    %c0_i32_0 = arith.constant 0 : i32
    %c0_i32_1 = arith.constant 0 : i32
    return %c0_i32, %c0_i32_0 : i32, i32
  }
  func.func @transform_6(%arg0: i32) -> (i32, i32) {
    %c0_i32 = arith.constant 0 : i32
    %c0_i32_0 = arith.constant 0 : i32
    %c0_i32_1 = arith.constant 0 : i32
    return %c0_i32, %c0_i32_0 : i32, i32
  }
  func.func @transform_7(%arg0: i32) -> (i32, i32) {
    %c0_i32 = arith.constant 0 : i32
    %c0_i32_0 = arith.constant 0 : i32
    %c0_i32_1 = arith.constant 0 : i32
    return %c0_i32, %c0_i32_0 : i32, i32
  }
  func.func @transform_8(%arg0: i32) -> (i32, i32) {
    %c0_i32 = arith.constant 0 : i32
    %c0_i32_0 = arith.constant 0 : i32
    return %arg0, %c0_i32 : i32, i32
  }
}

</mosaic_0001>

<bundles_post_ra>
// kernel: tpu_custom_call.1
= control target key start
LH: loop header
LB: loop body
LE: loop exit
PB: predicated region body
PF: predicated region fallthrough
CT: control target
= control target key end

     0   :  { %vm47_vm0 = vcmask 64512   ;;  %v1352_v3 = vmov 0.0   ;;  %vm1353_vm1 = vmmov 0   ;;  %v189_v33 = vlaneseq  ;;  %s1355_s30 = smov 32   ;;  %s1646_s1 = inlined_call_operand.vmem [shape: f32[8,128], index: 1, kind: input, shape index: {}]   ;;  %s1647_s0 = inlined_call_operand.vmem [shape: f32[64,8], index: 0, kind: input, shape index: {}]   ;;  %s1648_s2 = inlined_call_operand.vmem [shape: f32[32,128], index: 2, kind: input, shape index: {}]   ;;  %s1649_s3 = inlined_call_operand.vmem [shape: f32[1,128], index: 3, kind: input, shape index: {}]   ;;  %s1650_s4 = inlined_call_operand.vmem [shape: f32[32,16], index: 4, kind: input, shape index: {}]   ;;  %s1651_s7 = inlined_call_operand.<no memory space> [shape: f32[1,1], index: 7, kind: input, shape index: {}]   ;;  %s1652_s5 = inlined_call_operand.vmem [shape: f32[1,16], index: 5, kind: input, shape index: {}]   ;;  %s1653_s6 = inlined_call_operand.vmem [shape: f32[1,16], index: 6, kind: input, shape index: {}]   ;;  %s1654_s8 = inlined_call_operand.vmem [shape: f32[8,1], index: 8, kind: output, shape index: {}]  }
   0x1   :  { %v39_v0 = vld [vmem:[%s1646_s1] sm:$0xff]  ;;  %v32_v2 = vld [vmem:[%s1647_s0 + $0x8] sm:$0xff]  ;;  %1217 = vmatprep.subr.mxu1 %v1352_v3  ;;  %1225 = vmatprep.mubr.msk.f32.mxu1 %vm1353_vm1, %v1352_v3  ;;  %v33_v4 = vld [vmem:[%s1647_s0 + $0x10] sm:$0xff]  ;;  %vm197_vm5 = vcmask 261120   ;;  %vm1111_vm6 = vcmask 130048   ;;  %vm1123_vm7 = vcmask 7168  }
   0x2   :  { %v31_v1 = vld [vmem:[%s1647_s0] sm:$0xff]  ;;  %1203 = vmatprep.subr.mxu0 %v39_v0  ;;  %v1421_v5 = vld [vmem:[%s1648_s2 + $0x18] sm:$0xff]  ;;  %v1426_v6 = vld [vmem:[%s1648_s2 + $0x10] sm:$0xff]  ;;  %v190_v34 = vand.u32 127, %v189_v33 }
   0x3   :  { %1205 = vmatprep.mubr.msk.f32.mxu0 %vm47_vm0, %v31_v1  ;;  %1204 = vmatpush3.msra.mxu0 %v39_v0  ;;  %v34_v7 = vld [vmem:[%s1647_s0 + $0x18] sm:$0xff]  ;;  %v35_v8 = vld [vmem:[%s1647_s0 + $0x20] sm:$0xff]  ;;  %v1441_v9 = vld [vmem:[%s1648_s2 + $0x8] sm:$0xff] }
   0x4   :  { %1206 = vmatmul.mubr.msk.f32.vlgmr.msra.gmra.mxu0 %vm47_vm0, %v32_v2  ;;  %1239 = vmatprep.subr.mxu0 %v1352_v3  ;;  %v1451_v10 = vld [vmem:[%s1648_s2] sm:$0xff]  ;;  %v36_v11 = vld [vmem:[%s1647_s0 + $0x28] sm:$0xff]  ;;  %v37_v12 = vld [vmem:[%s1647_s0 + $0x30] sm:$0xff]  ;;  %vm191_vm2 = vcmp.ge.s32.totalorder %v190_v34, 64  ;;  %vm192_vm3 = vcmp.lt.s32.totalorder %v190_v34, 96 }
   0x5   :  { %1208 = vmatprep.mubr.msk.f32.mxu0 %vm47_vm0, %v33_v4  ;;  %1218 = vmatpush3.msra.mxu1 %v1421_v5  ;;  %v38_v13 = vld [vmem:[%s1647_s0 + $0x38] sm:$0xff]  ;;  %v1129_v14 = vld [vmem:[%s1649_s3] ss:$0 sm:$0xff]  ;;  %vm1492_vm4 = vmand %vm191_vm2, %vm192_vm3  ;;  %s1354_s3 = smov 64  }
   0x6   :  { %1219 = vmatprep.subr.mxu1 %v1352_v3  ;;  %1240 = vmatpush3.msra.mxu0 %v1421_v5  ;;  %v1017_v39 = vld [vmem:[%s1650_s4 + $0x8] sm:$0xff] }
   0x7   :  { %1220 = vmatpush3.msra.mxu1 %v1426_v6  ;;  %1241 = vmatprep.subr.mxu0 %v1352_v3 }
   0x8   :  { %1209 = vmatmul.mubr.msk.f32.gmra.mxu0 %vm47_vm0, %v34_v7  ;;  %1221 = vmatprep.subr.mxu1 %v1352_v3 }
   0x9   :  { %1211 = vmatprep.mubr.msk.f32.mxu0 %vm47_vm0, %v35_v8  ;;  %1222 = vmatpush3.msra.mxu1 %v1441_v9 }
   0xa   :  { %1223 = vmatprep.subr.mxu1 %v1352_v3  ;;  %1242 = vmatpush3.msra.mxu0 %v1426_v6 }
   0xb   :  { %1224 = vmatpush3.msra.mxu1 %v1451_v10  ;;  %1243 = vmatprep.subr.mxu0 %v1352_v3 }
   0xc   :  { %1212 = vmatmul.mubr.msk.f32.gmra.mxu0 %vm47_vm0, %v36_v11  ;;  %1226 = vmatmul.mubr.f32.vlgmr.msra.gmra.mxu1 %v1352_v3 }
   0xd   :  { %1214 = vmatprep.mubr.msk.f32.mxu0 %vm47_vm0, %v37_v12  ;;  %1228 = vmatprep.subr.mxu1 %v1352_v3 }
   0xe   :  { %1229 = vmatpush3.msra.mxu1 %v1421_v5  ;;  %1236 = vmatprep.mubr.msk.f32.mxu1 %vm1353_vm1, %v1352_v3 }
   0xf   :  { %1230 = vmatprep.subr.mxu1 %v1352_v3  ;;  %1244 = vmatpush3.msra.mxu0 %v1441_v9 }
  0x10   :  { %1215 = vmatmul.mubr.msk.f32.gmra.mxu0 %vm47_vm0, %v38_v13  ;;  %1231 = vmatpush3.msra.mxu1 %v1426_v6 }
  0x11   :  { %1232 = vmatprep.subr.mxu1 %v1352_v3  ;;  %1245 = vmatprep.subr.mxu0 %v1352_v3 }
  0x12   :  { %1233 = vmatpush3.msra.mxu1 %v1441_v9  ;;  %1246 = vmatpush3.msra.mxu0 %v1451_v10 }
  0x13   :  { %1234 = vmatprep.subr.mxu1 %v1352_v3  ;;  %1247 = vmatprep.mubr.msk.f32.mxu0 %vm1353_vm1, %v1352_v3 }
  0x14   :  { %1235 = vmatpush3.msra.mxu1 %v1451_v10  ;;  %1261 = vmatprep.subr.mxu0 %v1352_v3 }
  0x15   :  { %1250 = vmatprep.subr.mxu1 %v1352_v3 }
  0xc4   :  { %v1207_v15 = vpop.f32.mrf.mxu0 }
  0xc5   :  { %v144_v16 = vadd.f32 %v1207_v15, %v1129_v14 }
  0xc6   :  { %v138_v17 = vpop.f32.mrf.mxu0 }
  0xc7   :  { %178 = vst [vmem:[#allocation2 + $0x8] sm:$0xff] %v144_v16  ;;  %v139_v18 = vadd.f32 %v1129_v14, %v138_v17 }
  0xc8   :  { %v1210_v19 = vpop.f32.mrf.mxu0 }
  0xc9   :  { %177 = vst [vmem:[#allocation2] sm:$0xff] %v139_v18  ;;  %v154_v20 = vadd.f32 %v1210_v19, %v1129_v14 }
  0xca   :  { %v148_v21 = vpop.f32.mrf.mxu0 }
  0xcb   :  { %180 = vst [vmem:[#allocation2 + $0x18] sm:$0xff] %v154_v20  ;;  %v149_v22 = vadd.f32 %v1129_v14, %v148_v21 }
  0xcc   :  { %v1213_v23 = vpop.f32.mrf.mxu0  ;;  %v267_v24 = vpop.f32.mrf.mxu1 }
  0xcd   :  { %179 = vst [vmem:[#allocation2 + $0x10] sm:$0xff] %v149_v22  ;;  %v164_v25 = vadd.f32 %v1213_v23, %v1129_v14 }
  0xce   :  { %v158_v26 = vpop.f32.mrf.mxu0  ;;  %v1227_v27 = vpop.f32.mrf.mxu1 }
  0xcf   :  { %182 = vst [vmem:[#allocation2 + $0x28] sm:$0xff] %v164_v25  ;;  %v159_v28 = vadd.f32 %v1129_v14, %v158_v26 }
  0xd0   :  { %v1216_v29 = vpop.f32.mrf.mxu0 }
  0xd1   :  { %181 = vst [vmem:[#allocation2 + $0x20] sm:$0xff] %v159_v28  ;;  %v174_v30 = vadd.f32 %v1216_v29, %v1129_v14 }
  0xd2   :  { %v168_v31 = vpop.f32.mrf.mxu0 }
  0xd3   :  { %184 = vst [vmem:[#allocation2 + $0x38] sm:$0xff] %v174_v30  ;;  %v169_v32 = vadd.f32 %v1129_v14, %v168_v31 }
  0xd4   :  { %v194_v35 = vld [vmem:[#allocation2] ss:$8 sm:$0xf]  ;;  %v296_v56 = vld [vmem:[#allocation2 + $0x1] ss:$8 sm:$0xf] }
  0xd5   :  { %183 = vst [vmem:[#allocation2 + $0x30] sm:$0xff] %v169_v32  ;;  %v399_v18 = vld [vmem:[#allocation2 + $0x2] ss:$8 sm:$0xf] }
  0xdc   :  { %v195_v36 = vld [vmem:[#allocation2] ss:$8 sm:$0xf0]  ;;  %v297_v55 = vld [vmem:[#allocation2 + $0x1] ss:$8 sm:$0xf0] }
  0xdd   :  { %v196_v37 = vor.u32 %v195_v36, %v194_v35  ;;  %v298_v57 = vor.u32 %v297_v55, %v296_v56  ;;  %v400_v17 = vld [vmem:[#allocation2 + $0x2] ss:$8 sm:$0xf0] }
  0xde   :  { %v401_v19 = vor.u32 %v400_v17, %v399_v18 }
  0xdf   :  { %v271_v38 = vadd.f32 %v267_v24, %v196_v37 }
  0xe1   :  { %v272_v40 = vmul.f32 0.5, %v271_v38 }
  0xe3   :  { %v273_v41 = vsel %vm1492_vm4, %v271_v38, %v272_v40  ;;  %v503_v38 = vld [vmem:[#allocation2 + $0x3] ss:$8 sm:$0xf0] }
  0xe4   :  { %1320 = vtanh.f32 %v273_v41  ;;  %v502_v40 = vld [vmem:[#allocation2 + $0x3] ss:$8 sm:$0xf] }
  0xe5   :  { %v504_v41 = vor.u32 %v503_v38, %v502_v40  ;;  %v812_v40 = vld [vmem:[#allocation2 + $0x6] ss:$8 sm:$0xf0] }
  0xf1   :  { %v1321_v42 = vpop.eup %1320 }
  0xf2   :  { %v275_v43 = vmul.f32 0.5, %v1321_v42 }
  0xf4   :  { %v276_v44 = vadd.f32 0.5, %v275_v43 }
  0xf6   :  { %v277_v45 = vsel %vm1492_vm4, %v1321_v42, %v276_v44 }
  0xf7   :  { %280 = vrot.lane.b32.xlu0 %v277_v45, %s1354_s3  ;;  %v278_v48 = vmul.f32 0.0, %v277_v45 }
 0x169   :  { %v281_v46 = vpop.permute.xlu0 %280 }
 0x16a   :  { %v283_v47 = vmul.f32 %v281_v46, %v277_v45 }
 0x16c   :  { %285 = vrot.lane.b32.xlu0 %v283_v47, %s1355_s30 }
 0x1de   :  { %v286_v49 = vpop.permute.xlu0 %285 }
 0x1df   :  { %v288_v50 = vadd.f32 %v286_v49, %v278_v48 }
 0x1e1   :  { %1322 = vtanh.f32 %v288_v50 }
 0x1ee   :  { %v1323_v51 = vpop.eup %1322 }
 0x1ef   :  { %291 = vrot.lane.b32.xlu1 %v1323_v51, %s1354_s3 }
 0x261   :  { %v292_v52 = vpop.permute.xlu1 %291 }
 0x262   :  { %v294_v53 = vmul.f32 %v292_v52, %v277_v45 }
 0x264   :  { %300 = vrot.lane.b32.xlu1 %v294_v53, %s1355_s30 }
 0x2d6   :  { %v301_v54 = vpop.permute.xlu1 %300 }
 0x2d7   :  { %1237 = vmatmul.mubr.msk.f32.vlgmr.msra.gmra.mxu1 %vm197_vm5, %v301_v54 }
 0x2d8   :  { %1251 = vmatpush3.msra.mxu1 %v1421_v5  ;;  %1258 = vmatprep.mubr.msk.f32.mxu1 %vm1353_vm1, %v1352_v3 }
 0x2d9   :  { %1252 = vmatprep.subr.mxu1 %v1352_v3 }
 0x2da   :  { %1253 = vmatpush3.msra.mxu1 %v1426_v6 }
 0x2db   :  { %1254 = vmatprep.subr.mxu1 %v1352_v3 }
 0x2dc   :  { %1255 = vmatpush3.msra.mxu1 %v1441_v9 }
 0x2dd   :  { %1256 = vmatprep.subr.mxu1 %v1352_v3 }
 0x2de   :  { %1257 = vmatpush3.msra.mxu1 %v1451_v10 }
 0x2df   :  { %1272 = vmatprep.subr.mxu1 %v1352_v3 }
 0x397   :  { %v370_v58 = vpop.f32.mrf.mxu1 }
 0x398   :  { %v374_v59 = vadd.f32 %v370_v58, %v298_v57 }
 0x399   :  { %v1238_v60 = vpop.f32.mrf.mxu1 }
 0x39a   :  { %v375_v61 = vmul.f32 0.5, %v374_v59  ;;  %v606_v60 = vld [vmem:[#allocation2 + $0x4] ss:$8 sm:$0xf0] }
 0x39c   :  { %v376_v62 = vsel %vm1492_vm4, %v374_v59, %v375_v61  ;;  %v605_v61 = vld [vmem:[#allocation2 + $0x4] ss:$8 sm:$0xf] }
 0x39d   :  { %1324 = vtanh.f32 %v376_v62  ;;  %v607_v62 = vor.u32 %v606_v60, %v605_v61  ;;  %v915_v61 = vld [vmem:[#allocation2 + $0x7] ss:$8 sm:$0xf0] }
 0x3aa   :  { %v1325_v63 = vpop.eup %1324 }
 0x3ab   :  { %v378_v0 = vmul.f32 0.5, %v1325_v63 }
 0x3ad   :  { %v379_v1 = vadd.f32 0.5, %v378_v0 }
 0x3af   :  { %v380_v2 = vsel %vm1492_vm4, %v1325_v63, %v379_v1 }
 0x3b0   :  { %383 = vrot.lane.b32.xlu0 %v380_v2, %s1354_s3  ;;  %v381_v8 = vmul.f32 %v380_v2, %v288_v50 }
 0x422   :  { %v384_v4 = vpop.permute.xlu0 %383 }
 0x423   :  { %v386_v7 = vmul.f32 %v384_v4, %v380_v2 }
 0x425   :  { %388 = vrot.lane.b32.xlu1 %v386_v7, %s1355_s30 }
 0x497   :  { %v389_v11 = vpop.permute.xlu1 %388 }
 0x498   :  { %v391_v12 = vadd.f32 %v389_v11, %v381_v8 }
 0x49a   :  { %1326 = vtanh.f32 %v391_v12 }
 0x4a7   :  { %v1327_v13 = vpop.eup %1326 }
 0x4a8   :  { %394 = vrot.lane.b32.xlu0 %v1327_v13, %s1354_s3 }
 0x51a   :  { %v395_v14 = vpop.permute.xlu0 %394 }
 0x51b   :  { %v397_v15 = vmul.f32 %v395_v14, %v380_v2 }
 0x51d   :  { %403 = vrot.lane.b32.xlu1 %v397_v15, %s1355_s30 }
 0x58f   :  { %v404_v16 = vpop.permute.xlu1 %403 }
 0x590   :  { %1248 = vmatmul.mubr.msk.f32.vlgmr.msra.gmra.mxu0 %vm197_vm5, %v404_v16 }
 0x591   :  { %1262 = vmatpush3.msra.mxu0 %v1421_v5  ;;  %1269 = vmatprep.mubr.msk.f32.mxu0 %vm1353_vm1, %v1352_v3 }
 0x592   :  { %1263 = vmatprep.subr.mxu0 %v1352_v3 }
 0x593   :  { %1264 = vmatpush3.msra.mxu0 %v1426_v6 }
 0x594   :  { %1265 = vmatprep.subr.mxu0 %v1352_v3 }
 0x595   :  { %1266 = vmatpush3.msra.mxu0 %v1441_v9 }
 0x596   :  { %1267 = vmatprep.subr.mxu0 %v1352_v3 }
 0x597   :  { %1268 = vmatpush3.msra.mxu0 %v1451_v10 }
 0x598   :  { %1283 = vmatprep.subr.mxu0 %v1352_v3 }
 0x650   :  { %v473_v20 = vpop.f32.mrf.mxu0 }
 0x651   :  { %v477_v21 = vadd.f32 %v473_v20, %v401_v19 }
 0x652   :  { %v1249_v22 = vpop.f32.mrf.mxu0 }
 0x653   :  { %v478_v23 = vmul.f32 0.5, %v477_v21  ;;  %v709_v22 = vld [vmem:[#allocation2 + $0x5] ss:$8 sm:$0xf0] }
 0x655   :  { %v479_v24 = vsel %vm1492_vm4, %v477_v21, %v478_v23  ;;  %v708_v23 = vld [vmem:[#allocation2 + $0x5] ss:$8 sm:$0xf] }
 0x656   :  { %1328 = vtanh.f32 %v479_v24  ;;  %v710_v24 = vor.u32 %v709_v22, %v708_v23 }
 0x663   :  { %v1329_v25 = vpop.eup %1328 }
 0x664   :  { %v481_v26 = vmul.f32 0.5, %v1329_v25 }
 0x666   :  { %v482_v27 = vadd.f32 0.5, %v481_v26 }
 0x668   :  { %v483_v28 = vsel %vm1492_vm4, %v1329_v25, %v482_v27 }
 0x669   :  { %486 = vrot.lane.b32.xlu0 %v483_v28, %s1354_s3  ;;  %v484_v31 = vmul.f32 %v483_v28, %v391_v12 }
 0x6db   :  { %v487_v29 = vpop.permute.xlu0 %486 }
 0x6dc   :  { %v489_v30 = vmul.f32 %v487_v29, %v483_v28 }
 0x6de   :  { %491 = vrot.lane.b32.xlu1 %v489_v30, %s1355_s30 }
 0x750   :  { %v492_v32 = vpop.permute.xlu1 %491 }
 0x751   :  { %v494_v33 = vadd.f32 %v492_v32, %v484_v31 }
 0x753   :  { %1330 = vtanh.f32 %v494_v33 }
 0x760   :  { %v1331_v34 = vpop.eup %1330 }
 0x761   :  { %497 = vrot.lane.b32.xlu0 %v1331_v34, %s1354_s3 }
 0x7d3   :  { %v498_v35 = vpop.permute.xlu0 %497 }
 0x7d4   :  { %v500_v36 = vmul.f32 %v498_v35, %v483_v28 }
 0x7d6   :  { %506 = vrot.lane.b32.xlu1 %v500_v36, %s1355_s30 }
 0x848   :  { %v507_v37 = vpop.permute.xlu1 %506 }
 0x849   :  { %1259 = vmatmul.mubr.msk.f32.vlgmr.msra.gmra.mxu1 %vm197_vm5, %v507_v37 }
 0x84a   :  { %1273 = vmatpush3.msra.mxu1 %v1421_v5  ;;  %1280 = vmatprep.mubr.msk.f32.mxu1 %vm1353_vm1, %v1352_v3 }
 0x84b   :  { %1274 = vmatprep.subr.mxu1 %v1352_v3 }
 0x84c   :  { %1275 = vmatpush3.msra.mxu1 %v1426_v6 }
 0x84d   :  { %1276 = vmatprep.subr.mxu1 %v1352_v3 }
 0x84e   :  { %1277 = vmatpush3.msra.mxu1 %v1441_v9 }
 0x84f   :  { %1278 = vmatprep.subr.mxu1 %v1352_v3 }
 0x850   :  { %1279 = vmatpush3.msra.mxu1 %v1451_v10 }
 0x851   :  { %1294 = vmatprep.subr.mxu1 %v1352_v3 }
 0x909   :  { %v576_v42 = vpop.f32.mrf.mxu1 }
 0x90a   :  { %v580_v43 = vadd.f32 %v576_v42, %v504_v41  ;;  %v811_v41 = vld [vmem:[#allocation2 + $0x6] ss:$8 sm:$0xf] }
 0x90b   :  { %v1260_v44 = vpop.f32.mrf.mxu1  ;;  %v813_v42 = vor.u32 %v812_v40, %v811_v41 }
 0x90c   :  { %v581_v45 = vmul.f32 0.5, %v580_v43 }
 0x90e   :  { %v582_v46 = vsel %vm1492_vm4, %v580_v43, %v581_v45 }
 0x90f   :  { %1332 = vtanh.f32 %v582_v46 }
 0x91c   :  { %v1333_v47 = vpop.eup %1332 }
 0x91d   :  { %v584_v48 = vmul.f32 0.5, %v1333_v47 }
 0x91f   :  { %v585_v49 = vadd.f32 0.5, %v584_v48 }
 0x921   :  { %v586_v50 = vsel %vm1492_vm4, %v1333_v47, %v585_v49 }
 0x922   :  { %589 = vrot.lane.b32.xlu0 %v586_v50, %s1354_s3  ;;  %v587_v53 = vmul.f32 %v586_v50, %v494_v33 }
 0x994   :  { %v590_v51 = vpop.permute.xlu0 %589 }
 0x995   :  { %v592_v52 = vmul.f32 %v590_v51, %v586_v50 }
 0x997   :  { %594 = vrot.lane.b32.xlu1 %v592_v52, %s1355_s30 }
 0xa09   :  { %v595_v54 = vpop.permute.xlu1 %594 }
 0xa0a   :  { %v597_v55 = vadd.f32 %v595_v54, %v587_v53 }
 0xa0c   :  { %1334 = vtanh.f32 %v597_v55 }
 0xa19   :  { %v1335_v56 = vpop.eup %1334 }
 0xa1a   :  { %600 = vrot.lane.b32.xlu0 %v1335_v56, %s1354_s3 }
 0xa8c   :  { %v601_v57 = vpop.permute.xlu0 %600 }
 0xa8d   :  { %v603_v58 = vmul.f32 %v601_v57, %v586_v50 }
 0xa8f   :  { %609 = vrot.lane.b32.xlu1 %v603_v58, %s1355_s30 }
 0xb01   :  { %v610_v59 = vpop.permute.xlu1 %609 }
 0xb02   :  { %1270 = vmatmul.mubr.msk.f32.vlgmr.msra.gmra.mxu0 %vm197_vm5, %v610_v59 }
 0xb03   :  { %1284 = vmatpush3.msra.mxu0 %v1421_v5  ;;  %1291 = vmatprep.mubr.msk.f32.mxu0 %vm1353_vm1, %v1352_v3 }
 0xb04   :  { %1285 = vmatprep.subr.mxu0 %v1352_v3 }
 0xb05   :  { %1286 = vmatpush3.msra.mxu0 %v1426_v6 }
 0xb06   :  { %1287 = vmatprep.subr.mxu0 %v1352_v3 }
 0xb07   :  { %1288 = vmatpush3.msra.mxu0 %v1441_v9 }
 0xb08   :  { %1289 = vmatprep.subr.mxu0 %v1352_v3 }
 0xb09   :  { %1290 = vmatpush3.msra.mxu0 %v1451_v10 }
 0xb0a   :  { %1305 = vmatprep.subr.mxu0 %v1352_v3 }
 0xbc2   :  { %v679_v63 = vpop.f32.mrf.mxu0 }
 0xbc3   :  { %v683_v0 = vadd.f32 %v679_v63, %v607_v62  ;;  %v914_v62 = vld [vmem:[#allocation2 + $0x7] ss:$8 sm:$0xf] }
 0xbc4   :  { %v1271_v1 = vpop.f32.mrf.mxu0  ;;  %v916_v63 = vor.u32 %v915_v61, %v914_v62 }
 0xbc5   :  { %v684_v2 = vmul.f32 0.5, %v683_v0 }
 0xbc7   :  { %v685_v4 = vsel %vm1492_vm4, %v683_v0, %v684_v2 }
 0xbc8   :  { %1336 = vtanh.f32 %v685_v4 }
 0xbd5   :  { %v1337_v7 = vpop.eup %1336 }
 0xbd6   :  { %v687_v8 = vmul.f32 0.5, %v1337_v7 }
 0xbd8   :  { %v688_v11 = vadd.f32 0.5, %v687_v8 }
 0xbda   :  { %v689_v12 = vsel %vm1492_vm4, %v1337_v7, %v688_v11 }
 0xbdb   :  { %692 = vrot.lane.b32.xlu0 %v689_v12, %s1354_s3  ;;  %v690_v15 = vmul.f32 %v689_v12, %v597_v55 }
 0xc4d   :  { %v693_v13 = vpop.permute.xlu0 %692 }
 0xc4e   :  { %v695_v14 = vmul.f32 %v693_v13, %v689_v12 }
 0xc50   :  { %697 = vrot.lane.b32.xlu1 %v695_v14, %s1355_s30 }
 0xcc2   :  { %v698_v16 = vpop.permute.xlu1 %697 }
 0xcc3   :  { %v700_v17 = vadd.f32 %v698_v16, %v690_v15 }
 0xcc5   :  { %1338 = vtanh.f32 %v700_v17 }
 0xcd2   :  { %v1339_v18 = vpop.eup %1338 }
 0xcd3   :  { %703 = vrot.lane.b32.xlu0 %v1339_v18, %s1354_s3 }
 0xd45   :  { %v704_v19 = vpop.permute.xlu0 %703 }
 0xd46   :  { %v706_v20 = vmul.f32 %v704_v19, %v689_v12  ;;  %v1019_v19 = vld [vmem:[%s1650_s4 + $0x18] sm:$0xff] }
 0xd48   :  { %712 = vrot.lane.b32.xlu1 %v706_v20, %s1355_s30  ;;  %v1018_v20 = vld [vmem:[%s1650_s4 + $0x10] sm:$0xff] }
 0xdba   :  { %v713_v21 = vpop.permute.xlu1 %712 }
 0xdbb   :  { %1281 = vmatmul.mubr.msk.f32.vlgmr.msra.gmra.mxu1 %vm197_vm5, %v713_v21  ;;  %v1016_v21 = vld [vmem:[%s1650_s4] sm:$0xff] }
 0xdbc   :  { %1295 = vmatpush3.msra.mxu1 %v1421_v5  ;;  %1302 = vmatprep.mubr.msk.f32.mxu1 %vm1353_vm1, %v1352_v3 }
 0xdbd   :  { %1296 = vmatprep.subr.mxu1 %v1352_v3 }
 0xdbe   :  { %1297 = vmatpush3.msra.mxu1 %v1426_v6 }
 0xdbf   :  { %1298 = vmatprep.subr.mxu1 %v1352_v3 }
 0xdc0   :  { %1299 = vmatpush3.msra.mxu1 %v1441_v9 }
 0xdc1   :  { %1300 = vmatprep.subr.mxu1 %v1352_v3 }
 0xdc2   :  { %1301 = vmatpush3.msra.mxu1 %v1451_v10 }
 0xe7b   :  { %v782_v25 = vpop.f32.mrf.mxu1 }
 0xe7c   :  { %v786_v5 = vadd.f32 %v782_v25, %v710_v24 }
 0xe7d   :  { %v1282_v26 = vpop.f32.mrf.mxu1 }
 0xe7e   :  { %v787_v27 = vmul.f32 0.5, %v786_v5 }
 0xe80   :  { %v788_v28 = vsel %vm1492_vm4, %v786_v5, %v787_v27  ;;  %v13_v5 = vstv %s1651_s7 }
 0xe81   :  { %1340 = vtanh.f32 %v788_v28  ;;  %14 = vst [vmem:[#allocation3] sm:$0x1] %v13_v5 }
 0xe8e   :  { %v1341_v6 = vpop.eup %1340 }
 0xe8f   :  { %v790_v29 = vmul.f32 0.5, %v1341_v6 }
 0xe91   :  { %v791_v30 = vadd.f32 0.5, %v790_v29 }
 0xe93   :  { %v792_v9 = vsel %vm1492_vm4, %v1341_v6, %v791_v30  ;;  %v1147_v6 = vld [vmem:[%s1653_s6] ss:$0 sm:$0xff] }
 0xe94   :  { %795 = vrot.lane.b32.xlu0 %v792_v9, %s1354_s3  ;;  %v793_v32 = vmul.f32 %v792_v9, %v700_v17 }
 0xf06   :  { %v796_v10 = vpop.permute.xlu0 %795 }
 0xf07   :  { %v798_v31 = vmul.f32 %v796_v10, %v792_v9  ;;  %v1148_v10 = vld [vmem:[#allocation3] ss:$0 sm:$0xff] }
 0xf09   :  { %800 = vrot.lane.b32.xlu1 %v798_v31, %s1355_s30 }
 0xf7b   :  { %v801_v33 = vpop.permute.xlu1 %800 }
 0xf7c   :  { %v803_v34 = vadd.f32 %v801_v33, %v793_v32 }
 0xf7e   :  { %1342 = vtanh.f32 %v803_v34 }
 0xf8b   :  { %v1343_v35 = vpop.eup %1342 }
 0xf8c   :  { %806 = vrot.lane.b32.xlu0 %v1343_v35, %s1354_s3 }
 0xffe   :  { %v807_v36 = vpop.permute.xlu0 %806 }
 0xfff   :  { %v809_v37 = vmul.f32 %v807_v36, %v792_v9 }
0x1001   :  { %815 = vrot.lane.b32.xlu1 %v809_v37, %s1355_s30 }
0x1073   :  { %v816_v38 = vpop.permute.xlu1 %815 }
0x1074   :  { %1292 = vmatmul.mubr.msk.f32.vlgmr.msra.gmra.mxu0 %vm197_vm5, %v816_v38 }
0x1075   :  { %1313 = vmatprep.mubr.msk.f32.mxu0 %vm1353_vm1, %v1352_v3  ;;  %1306 = vmatpush3.msra.mxu0 %v1019_v19 }
0x1076   :  { %1307 = vmatprep.subr.mxu0 %v1352_v3 }
0x1077   :  { %1308 = vmatpush3.msra.mxu0 %v1018_v20 }
0x1078   :  { %1309 = vmatprep.subr.mxu0 %v1352_v3 }
0x1079   :  { %1310 = vmatpush3.msra.mxu0 %v1017_v39 }
0x107a   :  { %1311 = vmatprep.subr.mxu0 %v1352_v3  ;;  %v1145_v3 = vld [vmem:[%s1652_s5] ss:$0 sm:$0xff] }
0x107b   :  { %1312 = vmatpush3.msra.mxu0 %v1016_v21 }
0x1134   :  { %v885_v43 = vpop.f32.mrf.mxu0 }
0x1135   :  { %v889_v44 = vadd.f32 %v885_v43, %v813_v42 }
0x1136   :  { %v1293_v45 = vpop.f32.mrf.mxu0 }
0x1137   :  { %v890_v46 = vmul.f32 0.5, %v889_v44 }
0x1139   :  { %v891_v47 = vsel %vm1492_vm4, %v889_v44, %v890_v46 }
0x113a   :  { %1344 = vtanh.f32 %v891_v47 }
0x1147   :  { %v1345_v48 = vpop.eup %1344 }
0x1148   :  { %v893_v49 = vmul.f32 0.5, %v1345_v48 }
0x114a   :  { %v894_v50 = vadd.f32 0.5, %v893_v49 }
0x114c   :  { %v895_v51 = vsel %vm1492_vm4, %v1345_v48, %v894_v50 }
0x114d   :  { %898 = vrot.lane.b32.xlu0 %v895_v51, %s1354_s3  ;;  %v896_v54 = vmul.f32 %v895_v51, %v803_v34 }
0x11bf   :  { %v899_v52 = vpop.permute.xlu0 %898 }
0x11c0   :  { %v901_v53 = vmul.f32 %v899_v52, %v895_v51 }
0x11c2   :  { %903 = vrot.lane.b32.xlu1 %v901_v53, %s1355_s30 }
0x1234   :  { %v904_v55 = vpop.permute.xlu1 %903 }
0x1235   :  { %v906_v56 = vadd.f32 %v904_v55, %v896_v54 }
0x1237   :  { %1346 = vtanh.f32 %v906_v56 }
0x1244   :  { %v1347_v57 = vpop.eup %1346 }
0x1245   :  { %909 = vrot.lane.b32.xlu0 %v1347_v57, %s1354_s3 }
0x12b7   :  { %v910_v58 = vpop.permute.xlu0 %909 }
0x12b8   :  { %v912_v59 = vmul.f32 %v910_v58, %v895_v51 }
0x12ba   :  { %918 = vrot.lane.b32.xlu1 %v912_v59, %s1355_s30 }
0x132c   :  { %v919_v60 = vpop.permute.xlu1 %918 }
0x132d   :  { %1303 = vmatmul.mubr.msk.f32.vlgmr.msra.gmra.mxu1 %vm197_vm5, %v919_v60 }
0x13ed   :  { %v988_v0 = vpop.f32.mrf.mxu1 }
0x13ee   :  { %v992_v1 = vadd.f32 %v988_v0, %v916_v63 }
0x13ef   :  { %v1304_v2 = vpop.f32.mrf.mxu1 }
0x13f0   :  { %v993_v4 = vmul.f32 0.5, %v992_v1 }
0x13f2   :  { %v994_v7 = vsel %vm1492_vm4, %v992_v1, %v993_v4 }
0x13f3   :  { %1348 = vtanh.f32 %v994_v7 }
0x1400   :  { %v1349_v8 = vpop.eup %1348 }
0x1401   :  { %v996_v11 = vmul.f32 0.5, %v1349_v8 }
0x1403   :  { %v997_v12 = vadd.f32 0.5, %v996_v11 }
0x1405   :  { %v998_v13 = vsel %vm1492_vm4, %v1349_v8, %v997_v12 }
0x1406   :  { %1001 = vrot.lane.b32.xlu0 %v998_v13, %s1354_s3  ;;  %v999_v16 = vmul.f32 %v998_v13, %v906_v56 }
0x1478   :  { %v1002_v14 = vpop.permute.xlu0 %1001 }
0x1479   :  { %v1004_v15 = vmul.f32 %v1002_v14, %v998_v13 }
0x147b   :  { %1006 = vrot.lane.b32.xlu1 %v1004_v15, %s1355_s30 }
0x14ed   :  { %v1007_v17 = vpop.permute.xlu1 %1006 }
0x14ee   :  { %v1009_v18 = vadd.f32 %v1007_v17, %v999_v16 }
0x14f0   :  { %1350 = vtanh.f32 %v1009_v18 }
0x14fd   :  { %v1351_v22 = vpop.eup %1350 }
0x14fe   :  { %1012 = vrot.lane.b32.xlu0 %v1351_v22, %s1354_s3 }
0x1570   :  { %v1013_v23 = vpop.permute.xlu0 %1012 }
0x1571   :  { %v1015_v24 = vmul.f32 %v1013_v23, %v998_v13 }
0x1573   :  { %1028 = vrot.lane.b32.xlu1 %v1015_v24, %s1355_s30 }
0x15e5   :  { %v1029_v25 = vpop.permute.xlu1 %1028 }
0x15e6   :  { %1314 = vmatmul.mubr.msk.f32.vlgmr.msra.gmra.mxu0 %vm197_vm5, %v1029_v25 }
0x16a6   :  { %v1098_v26 = vpop.f32.mrf.mxu0 }
0x16a7   :  { %v1099_v27 = vadd.f32 %v1145_v3, %v1098_v26 }
0x16a8   :  { %v1315_v28 = vpop.f32.mrf.mxu0 }
0x16a9   :  { %v1102_v29 = vmax.f32 %v1099_v27, 0.0 }
0x16ab   :  { %v1110_v30 = vmul.f32 %v1147_v6, %v1102_v29 }
0x16ad   :  { %v1112_v9 = vsel %vm1111_vm6, %v1110_v30, 0.0 }
0x16ae   :  { %1113 = vadd.xlane.f32.xlu0 %v1112_v9 }
0x1737   :  { %v1114_v31 = vpop.xlane.xlu0 %1113 }
0x1738   :  { %v1122_v32 = vadd.f32 %v1148_v10, %v1114_v31 }
0x173a   :  { %1124 = vst.msk [vmem:[%s1654_s8] sm:$0xff] %vm1123_vm7, %v1122_v32 }

</bundles_post_ra>
